<compile_context>
chip_gen: v7x
topology: tpu7x:2x2x1
jax: 0.10.0
libtpu: 0.0.40
codegen_flags: <defaults>
</compile_context>

<pallas_src>
import functools

import jax
import jax.numpy as jnp
from jax.experimental import pallas as pl
from jax.experimental.pallas import tpu as pltpu


def _round_up(n, m):
    return ((n + m - 1) // m) * m


def dqn_mlp_kernel(x_ref, w1_ref, b1_ref, w2_ref, b2_ref, w3_ref, b3_ref, o_ref):
    """Fused DQN forward for one batch tile: fc1 -> relu -> fc2 -> relu -> fc3.

    All three layers run on the MXU with f32 accumulation (fc1 uses a K=8
    zero-padded operand pair); ReLU / bias adds run on the VPU.
    """
    # fc1: (Bt, 8) @ (8, 128); the 6 padded K columns of x / rows of w1 are zero.
    h1 = jnp.dot(x_ref[...], w1_ref[...],
                 preferred_element_type=jnp.float32) + b1_ref[...]
    h1 = jnp.maximum(h1, 0.0)                                   # (Bt, 128)
    # fc2: (Bt, 128) @ (128, 256)
    h2 = jnp.dot(h1, w2_ref[...],
                 preferred_element_type=jnp.float32) + b2_ref[...]
    h2 = jnp.maximum(h2, 0.0)                                   # (Bt, 256)
    # fc3: (Bt, 256) @ (256, 8); only 8 output lanes -> minimal HBM writeback.
    out = jnp.dot(h2, w3_ref[...],
                  preferred_element_type=jnp.float32) + b3_ref[...]
    o_ref[...] = out.astype(o_ref.dtype)                        # (Bt, 8)


@functools.partial(jax.jit, static_argnames=("block_b",))
def dqn_forward(x, params, *, block_b=1024):
    """Runs the fused DQN MLP. x: (B, 2) f32. Returns (B, 3) f32."""
    w1, b1, w2, b2, w3, b3 = params
    B = x.shape[0]
    n_in = w1.shape[0]           # 2
    n_out = w3.shape[1]          # 3
    k_pad = 8                    # fc1 K padded to one sublane group
    n_pad = 8                    # output lanes padded 3 -> 8 (== full array last dim)

    # Zero-pad fc1 input features / weights to K=8, fc3 outputs to 8 columns.
    w1p = jnp.zeros((k_pad, w1.shape[1]), w1.dtype).at[:n_in, :].set(w1)
    w3p = jnp.zeros((w3.shape[0], n_pad), w3.dtype).at[:, :n_out].set(w3)
    b3p = jnp.zeros((1, n_pad), b3.dtype).at[:, :n_out].set(b3)

    # Near-even batch tiling: padding is at most ~8 rows per tile.
    B8 = _round_up(B, 8)
    n_tiles = pl.cdiv(B8, block_b)
    bt = _round_up(pl.cdiv(B8, n_tiles), 8)
    b_pad = bt * n_tiles

    # Pad batch rows and features (2 -> 8) in one shot.
    x = jnp.pad(x, ((0, b_pad - B), (0, k_pad - n_in)))

    def resident(arr):
        # Weights / biases: same block for every grid step -> DMA'd once,
        # stay resident in VMEM across the whole batch sweep.
        return pl.BlockSpec(arr.shape, lambda i: (0, 0))

    # Advisory cost hint so XLA can overlap this small custom call.
    flops = 2 * b_pad * (k_pad * 128 + 128 * 256 + 256 * n_pad)
    weight_bytes = 4 * (k_pad * 128 + 128 + 128 * 256 + 256 + 256 * n_pad + n_pad)
    cost = pl.CostEstimate(
        flops=flops,
        transcendentals=0,
        bytes_accessed=b_pad * (k_pad + n_pad) * 4 + weight_bytes,
    )

    out = pl.pallas_call(
        dqn_mlp_kernel,
        out_shape=jax.ShapeDtypeStruct((b_pad, n_pad), jnp.float32),
        grid=(n_tiles,),
        in_specs=[
            pl.BlockSpec((bt, k_pad), lambda i: (i, 0)),   # x: tiled over batch
            resident(w1p), resident(b1),
            resident(w2), resident(b2),
            resident(w3p), resident(b3p),
        ],
        out_specs=pl.BlockSpec((bt, n_pad), lambda i: (i, 0)),
        compiler_params=pltpu.CompilerParams(
            dimension_semantics=("parallel",),             # megacore-eligible axis
            vmem_limit_bytes=32 * 1024 * 1024,
        ),
        cost_estimate=cost,
    )(x, w1p, b1, w2, b2, w3p, b3p)

    return out[:B, :n_out]


def init_params(key):
    """Deterministic init mirroring nn.Linear default (uniform +- 1/sqrt(fan_in))."""
    def linear(key, fan_in, fan_out):
        kw, kb = jax.random.split(key)
        bound = 1.0 / jnp.sqrt(fan_in)
        w = jax.random.uniform(kw, (fan_in, fan_out), jnp.float32, -bound, bound)
        b = jax.random.uniform(kb, (1, fan_out), jnp.float32, -bound, bound)
        return w, b

    k1, k2, k3 = jax.random.split(key, 3)
    w1, b1 = linear(k1, 2, 128)
    w2, b2 = linear(k2, 128, 256)
    w3, b3 = linear(k3, 256, 3)
    return w1, b1, w2, b2, w3, b3


def dqn_reference(x, params):
    w1, b1, w2, b2, w3, b3 = params
    h1 = jnp.maximum(x @ w1 + b1, 0.0)
    h2 = jnp.maximum(h1 @ w2 + b2, 0.0)
    return h2 @ w3 + b3


if __name__ == "__main__":
    key = jax.random.PRNGKey(0)
    kx, kp = jax.random.split(key)

    B = 8
    x = jax.random.normal(kx, (B, 2), dtype=jnp.float32)   # DQN takes a 2-dim state
    params = init_params(kp)

    out = dqn_forward(x, params)
    out = jax.block_until_ready(out)

    ref = dqn_reference(x, params)
    assert out.shape == (B, 3), out.shape
    assert jnp.allclose(out, ref, atol=1e-5, rtol=1e-5), "mismatch vs reference"

    # Also exercise a non-multiple batch with a small block to hit the tiled/padded path.
    x_big = jax.random.normal(kx, (100, 2), dtype=jnp.float32)
    out_big = jax.block_until_ready(dqn_forward(x_big, params, block_b=32))
    ref_big = dqn_reference(x_big, params)
    assert out_big.shape == (100, 3), out_big.shape
    assert jnp.allclose(out_big, ref_big, atol=1e-4, rtol=1e-4), "mismatch (tiled batch)"

    print("KERNEL_OK")
</pallas_src>

<mosaic_0001>
module attributes {stable_mosaic.version = 11 : i64} {
  func.func @dqn_mlp_kernel(%arg0: i32, %arg1: memref<8x8xf32, #tpu.memory_space<vmem>>, %arg2: memref<8x128xf32, #tpu.memory_space<vmem>>, %arg3: memref<1x128xf32, #tpu.memory_space<vmem>>, %arg4: memref<128x256xf32, #tpu.memory_space<vmem>>, %arg5: memref<1x256xf32, #tpu.memory_space<vmem>>, %arg6: memref<256x8xf32, #tpu.memory_space<vmem>>, %arg7: memref<1x8xf32, #tpu.memory_space<vmem>>, %arg8: memref<8x8xf32, #tpu.memory_space<vmem>>) attributes {dimension_semantics = [#tpu.dimension_semantics<parallel>], iteration_bounds = array<i64: 1>, scalar_prefetch = 0 : i64, scratch_operands = 0 : i64, tpu.core_type = #tpu.core_type<tc>, window_params = [{transform_indices = @transform_0, window_bounds = array<i64: 8, 8>}, {pipeline_mode = #tpu.pipeline_mode<synchronous>, transform_indices = @transform_1, window_bounds = array<i64: 8, 128>}, {pipeline_mode = #tpu.pipeline_mode<synchronous>, transform_indices = @transform_2, window_bounds = array<i64: 1, 128>}, {pipeline_mode = #tpu.pipeline_mode<synchronous>, transform_indices = @transform_3, window_bounds = array<i64: 128, 256>}, {pipeline_mode = #tpu.pipeline_mode<synchronous>, transform_indices = @transform_4, window_bounds = array<i64: 1, 256>}, {pipeline_mode = #tpu.pipeline_mode<synchronous>, transform_indices = @transform_5, window_bounds = array<i64: 256, 8>}, {pipeline_mode = #tpu.pipeline_mode<synchronous>, transform_indices = @transform_6, window_bounds = array<i64: 1, 8>}, {transform_indices = @transform_7, window_bounds = array<i64: 8, 8>}]} {
    %c0 = arith.constant 0 : index
    %c0_0 = arith.constant 0 : index
    %0 = vector.load %arg1[%c0, %c0_0] : memref<8x8xf32, #tpu.memory_space<vmem>>, vector<8x8xf32>
    %c0_1 = arith.constant 0 : index
    %c0_2 = arith.constant 0 : index
    %1 = vector.load %arg2[%c0_1, %c0_2] : memref<8x128xf32, #tpu.memory_space<vmem>>, vector<8x128xf32>
    %cst = arith.constant dense<0.000000e+00> : vector<8x128xf32>
    %2 = tpu.matmul %0, %1, %cst {dimension_numbers = #tpu.dot_dimension_numbers<[1], [0], [0], [1], [0, 0, 1, 1], [], []>} : vector<8x8xf32>, vector<8x128xf32>, vector<8x128xf32> -> vector<8x128xf32>
    %c0_3 = arith.constant 0 : index
    %c0_4 = arith.constant 0 : index
    %3 = vector.load %arg3[%c0_3, %c0_4] : memref<1x128xf32, #tpu.memory_space<vmem>>, vector<1x128xf32>
    %4 = vector.broadcast %3 : vector<1x128xf32> to vector<8x128xf32>
    %5 = arith.addf %2, %4 : vector<8x128xf32>
    %cst_5 = arith.constant 0.000000e+00 : f32
    %6 = vector.broadcast %cst_5 : f32 to vector<8x128xf32>
    %7 = arith.maximumf %5, %6 : vector<8x128xf32>
    %c0_6 = arith.constant 0 : index
    %c0_7 = arith.constant 0 : index
    %8 = vector.load %arg4[%c0_6, %c0_7] : memref<128x256xf32, #tpu.memory_space<vmem>>, vector<128x256xf32>
    %cst_8 = arith.constant dense<0.000000e+00> : vector<8x256xf32>
    %9 = tpu.matmul %7, %8, %cst_8 {dimension_numbers = #tpu.dot_dimension_numbers<[1], [0], [0], [1], [0, 0, 1, 1], [], []>} : vector<8x128xf32>, vector<128x256xf32>, vector<8x256xf32> -> vector<8x256xf32>
    %c0_9 = arith.constant 0 : index
    %c0_10 = arith.constant 0 : index
    %10 = vector.load %arg5[%c0_9, %c0_10] : memref<1x256xf32, #tpu.memory_space<vmem>>, vector<1x256xf32>
    %11 = vector.broadcast %10 : vector<1x256xf32> to vector<8x256xf32>
    %12 = arith.addf %9, %11 : vector<8x256xf32>
    %cst_11 = arith.constant 0.000000e+00 : f32
    %13 = vector.broadcast %cst_11 : f32 to vector<8x256xf32>
    %14 = arith.maximumf %12, %13 : vector<8x256xf32>
    %c0_12 = arith.constant 0 : index
    %c0_13 = arith.constant 0 : index
    %15 = vector.load %arg6[%c0_12, %c0_13] : memref<256x8xf32, #tpu.memory_space<vmem>>, vector<256x8xf32>
    %cst_14 = arith.constant dense<0.000000e+00> : vector<8x8xf32>
    %16 = tpu.matmul %14, %15, %cst_14 {dimension_numbers = #tpu.dot_dimension_numbers<[1], [0], [0], [1], [0, 0, 1, 1], [], []>} : vector<8x256xf32>, vector<256x8xf32>, vector<8x8xf32> -> vector<8x8xf32>
    %c0_15 = arith.constant 0 : index
    %c0_16 = arith.constant 0 : index
    %17 = vector.load %arg7[%c0_15, %c0_16] : memref<1x8xf32, #tpu.memory_space<vmem>>, vector<1x8xf32>
    %18 = vector.broadcast %17 : vector<1x8xf32> to vector<8x8xf32>
    %19 = arith.addf %16, %18 : vector<8x8xf32>
    %c0_17 = arith.constant 0 : index
    %c0_18 = arith.constant 0 : index
    %20 = vector.load %arg8[%c0_17, %c0_18] : memref<8x8xf32, #tpu.memory_space<vmem>>, vector<8x8xf32>
    tpu.vector_store %arg8[%c0_17, %c0_18], %19 {strides = array<i32>} : memref<8x8xf32, #tpu.memory_space<vmem>>, vector<8x8xf32>,
    return
  }
  func.func @transform_0(%arg0: i32) -> (i32, i32) {
    %c0_i32 = arith.constant 0 : i32
    %c0_i32_0 = arith.constant 0 : i32
    return %arg0, %c0_i32 : i32, i32
  }
  func.func @transform_1(%arg0: i32) -> (i32, i32) {
    %c0_i32 = arith.constant 0 : i32
    %c0_i32_0 = arith.constant 0 : i32
    %c0_i32_1 = arith.constant 0 : i32
    return %c0_i32, %c0_i32_0 : i32, i32
  }
  func.func @transform_2(%arg0: i32) -> (i32, i32) {
    %c0_i32 = arith.constant 0 : i32
    %c0_i32_0 = arith.constant 0 : i32
    %c0_i32_1 = arith.constant 0 : i32
    return %c0_i32, %c0_i32_0 : i32, i32
  }
  func.func @transform_3(%arg0: i32) -> (i32, i32) {
    %c0_i32 = arith.constant 0 : i32
    %c0_i32_0 = arith.constant 0 : i32
    %c0_i32_1 = arith.constant 0 : i32
    return %c0_i32, %c0_i32_0 : i32, i32
  }
  func.func @transform_4(%arg0: i32) -> (i32, i32) {
    %c0_i32 = arith.constant 0 : i32
    %c0_i32_0 = arith.constant 0 : i32
    %c0_i32_1 = arith.constant 0 : i32
    return %c0_i32, %c0_i32_0 : i32, i32
  }
  func.func @transform_5(%arg0: i32) -> (i32, i32) {
    %c0_i32 = arith.constant 0 : i32
    %c0_i32_0 = arith.constant 0 : i32
    %c0_i32_1 = arith.constant 0 : i32
    return %c0_i32, %c0_i32_0 : i32, i32
  }
  func.func @transform_6(%arg0: i32) -> (i32, i32) {
    %c0_i32 = arith.constant 0 : i32
    %c0_i32_0 = arith.constant 0 : i32
    %c0_i32_1 = arith.constant 0 : i32
    return %c0_i32, %c0_i32_0 : i32, i32
  }
  func.func @transform_7(%arg0: i32) -> (i32, i32) {
    %c0_i32 = arith.constant 0 : i32
    %c0_i32_0 = arith.constant 0 : i32
    return %arg0, %c0_i32 : i32, i32
  }
}

</mosaic_0001>

<bundles_post_ra>
// kernel: dqn_forward.1
= control target key start
LH: loop header
LB: loop body
LE: loop exit
PB: predicated region body
PF: predicated region fallthrough
CT: control target
= control target key end

     0   :  { %vm35_vm0 = vcmask 64512   ;;  %v452_v0 = vmov 0.0   ;;  %vm453_vm1 = vmmov 0   ;;  %s706_s1 = inlined_call_operand.vmem [shape: f32[8,128], index: 1, kind: input, shape index: {}]   ;;  %s707_s0 = inlined_call_operand.vmem [shape: f32[8,8], index: 0, kind: input, shape index: {}]   ;;  %s708_s3 = inlined_call_operand.vmem [shape: f32[128,256], index: 3, kind: input, shape index: {}]   ;;  %s709_s5 = inlined_call_operand.vmem [shape: f32[256,8], index: 5, kind: input, shape index: {}]   ;;  %s710_s2 = inlined_call_operand.vmem [shape: f32[1,128], index: 2, kind: input, shape index: {}]   ;;  %s711_s4 = inlined_call_operand.vmem [shape: f32[1,256], index: 4, kind: input, shape index: {}]   ;;  %s712_s6 = inlined_call_operand.vmem [shape: f32[1,8], index: 6, kind: input, shape index: {}]   ;;  %s713_s7 = inlined_call_operand.vmem [shape: f32[8,8], index: 7, kind: output, shape index: {}]  }
   0x1   :  { %381 = vmatprep.subr.mxu0 %v452_v0  ;;  %v27_v1 = vld [vmem:[%s706_s1] sm:$0xff]  ;;  %383 = vmatprep.mubr.msk.f32.mxu0 %vm453_vm1, %v452_v0  ;;  %v111_v3 = vld [vmem:[%s708_s3 + $0x8] sm:$0xff]  ;;  %v113_v4 = vld [vmem:[%s708_s3 + $0x18] sm:$0xff] }
   0x2   :  { %v26_v2 = vld [vmem:[%s707_s0] sm:$0xff]  ;;  %382 = vmatpush3.msra.mxu0 %v27_v1  ;;  %v112_v6 = vld [vmem:[%s708_s3 + $0x10] sm:$0xff]  ;;  %218 = vmatprep.mubr.f32.mxu1 %v452_v0  ;;  %v386_v7 = vpack.c.bf16 %v113_v4, %v111_v3  ;;  %v115_v9 = vld [vmem:[%s708_s3 + $0x28] sm:$0xff] }
   0x3   :  { %v110_v5 = vld [vmem:[%s708_s3] sm:$0xff]  ;;  %384 = vmatmul.mubr.msk.f32.vlgmr.msra.gmra.mrb[0].mxu0 %vm35_vm0, %v26_v2  ;;  %v117_v10 = vld [vmem:[%s708_s3 + $0x38] sm:$0xff]  ;;  %v116_v13 = vld [vmem:[%s708_s3 + $0x30] sm:$0xff] }
   0x4   :  { %v388_v8 = vpack.c.bf16 %v112_v6, %v110_v5  ;;  %v114_v11 = vld [vmem:[%s708_s3 + $0x20] sm:$0xff]  ;;  %v390_v12 = vpack.c.bf16 %v117_v10, %v115_v9  ;;  %v119_v14 = vld [vmem:[%s708_s3 + $0x48] sm:$0xff]  ;;  %v121_v15 = vld [vmem:[%s708_s3 + $0x58] sm:$0xff]  ;;  %387 = vmatprep.subr.bf16.mxu1 %v386_v7 }
   0x5   :  { %v392_v16 = vpack.c.bf16 %v116_v13, %v114_v11  ;;  %v394_v17 = vpack.c.bf16 %v121_v15, %v119_v14  ;;  %v118_v18 = vld [vmem:[%s708_s3 + $0x40] sm:$0xff]  ;;  %v120_v19 = vld [vmem:[%s708_s3 + $0x50] sm:$0xff]  ;;  %v123_v20 = vld [vmem:[%s708_s3 + $0x68] sm:$0xff] }
   0x6   :  { %389 = vmatpush1.bf16.msra.mxu1 %v388_v8  ;;  %v125_v21 = vld [vmem:[%s708_s3 + $0x78] sm:$0xff]  ;;  %v396_v22 = vpack.c.bf16 %v120_v19, %v118_v18  ;;  %v122_v24 = vld [vmem:[%s708_s3 + $0x60] sm:$0xff]  ;;  %v124_v25 = vld [vmem:[%s708_s3 + $0x70] sm:$0xff] }
   0x7   :  { %391 = vmatprep.subr.bf16.mxu1 %v390_v12  ;;  %v398_v23 = vpack.c.bf16 %v125_v21, %v123_v20  ;;  %v127_v26 = vld [vmem:[%s708_s3 + $0x88] sm:$0xff]  ;;  %v129_v27 = vld [vmem:[%s708_s3 + $0x98] sm:$0xff]  ;;  %v400_v28 = vpack.c.bf16 %v124_v25, %v122_v24  ;;  %v126_v30 = vld [vmem:[%s708_s3 + $0x80] sm:$0xff] }
   0x8   :  { %v402_v29 = vpack.c.bf16 %v129_v27, %v127_v26  ;;  %v128_v31 = vld [vmem:[%s708_s3 + $0x90] sm:$0xff]  ;;  %v131_v32 = vld [vmem:[%s708_s3 + $0xa8] sm:$0xff]  ;;  %v133_v33 = vld [vmem:[%s708_s3 + $0xb8] sm:$0xff] }
   0x9   :  { %v404_v34 = vpack.c.bf16 %v128_v31, %v126_v30  ;;  %v406_v35 = vpack.c.bf16 %v133_v33, %v131_v32  ;;  %v130_v36 = vld [vmem:[%s708_s3 + $0xa0] sm:$0xff]  ;;  %v132_v37 = vld [vmem:[%s708_s3 + $0xb0] sm:$0xff]  ;;  %v135_v38 = vld [vmem:[%s708_s3 + $0xc8] sm:$0xff] }
   0xa   :  { %393 = vmatpush1.bf16.msra.mxu1 %v392_v16  ;;  %v137_v39 = vld [vmem:[%s708_s3 + $0xd8] sm:$0xff]  ;;  %v408_v40 = vpack.c.bf16 %v132_v37, %v130_v36  ;;  %v134_v42 = vld [vmem:[%s708_s3 + $0xc0] sm:$0xff]  ;;  %v136_v43 = vld [vmem:[%s708_s3 + $0xd0] sm:$0xff] }
   0xb   :  { %395 = vmatprep.subr.bf16.mxu1 %v394_v17  ;;  %v410_v41 = vpack.c.bf16 %v137_v39, %v135_v38  ;;  %v412_v44 = vpack.c.bf16 %v136_v43, %v134_v42  ;;  %v139_v45 = vld [vmem:[%s708_s3 + $0xe8] sm:$0xff]  ;;  %v141_v46 = vld [vmem:[%s708_s3 + $0xf8] sm:$0xff]  ;;  %v138_v48 = vld [vmem:[%s708_s3 + $0xe0] sm:$0xff] }
   0xc   :  { %v414_v47 = vpack.c.bf16 %v141_v46, %v139_v45  ;;  %v140_v49 = vld [vmem:[%s708_s3 + $0xf0] sm:$0xff]  ;;  %v243_v51 = vld [vmem:[%s709_s5 + $0x80] sm:$0xff]  ;;  %v244_v52 = vld [vmem:[%s709_s5 + $0x88] sm:$0xff] }
   0xd   :  { %v416_v50 = vpack.c.bf16 %v140_v49, %v138_v48  ;;  %v227_v53 = vld [vmem:[%s709_s5] sm:$0xff]  ;;  %v418_v54 = vpack.c.bf16 %v244_v52, %v243_v51  ;;  %v228_v55 = vld [vmem:[%s709_s5 + $0x8] sm:$0xff]  ;;  %v245_v56 = vld [vmem:[%s709_s5 + $0x90] sm:$0xff] }
   0xe   :  { %397 = vmatpush1.bf16.msra.mxu1 %v396_v22  ;;  %v246_v57 = vld [vmem:[%s709_s5 + $0x98] sm:$0xff]  ;;  %v420_v58 = vpack.c.bf16 %v228_v55, %v227_v53  ;;  %v229_v60 = vld [vmem:[%s709_s5 + $0x10] sm:$0xff]  ;;  %v247_v62 = vld [vmem:[%s709_s5 + $0xa0] sm:$0xff] }
   0xf   :  { %399 = vmatprep.subr.bf16.mxu1 %v398_v23  ;;  %v422_v59 = vpack.c.bf16 %v246_v57, %v245_v56  ;;  %v230_v61 = vld [vmem:[%s709_s5 + $0x18] sm:$0xff]  ;;  %419 = vmatprep.subr.bf16.mxu0 %v418_v54  ;;  %v248_v63 = vld [vmem:[%s709_s5 + $0xa8] sm:$0xff]  ;;  %v231_v2 = vld [vmem:[%s709_s5 + $0x20] sm:$0xff] }
  0x10   :  { %421 = vmatpush3.bf16.msra.mxu0 %v420_v58  ;;  %v424_v0 = vpack.c.bf16 %v230_v61, %v229_v60  ;;  %v426_v1 = vpack.c.bf16 %v248_v63, %v247_v62  ;;  %v232_v3 = vld [vmem:[%s709_s5 + $0x28] sm:$0xff]  ;;  %v249_v4 = vld [vmem:[%s709_s5 + $0xb0] sm:$0xff]  ;;  %v250_v5 = vld [vmem:[%s709_s5 + $0xb8] sm:$0xff] }
  0x11   :  { %423 = vmatprep.subr.bf16.mxu0 %v422_v59  ;;  %v428_v6 = vpack.c.bf16 %v232_v3, %v231_v2  ;;  %v430_v7 = vpack.c.bf16 %v250_v5, %v249_v4  ;;  %v233_v8 = vld [vmem:[%s709_s5 + $0x30] sm:$0xff]  ;;  %v234_v9 = vld [vmem:[%s709_s5 + $0x38] sm:$0xff]  ;;  %v251_v10 = vld [vmem:[%s709_s5 + $0xc0] sm:$0xff] }
  0x12   :  { %401 = vmatpush1.bf16.msra.mxu1 %v400_v28  ;;  %v252_v11 = vld [vmem:[%s709_s5 + $0xc8] sm:$0xff]  ;;  %v432_v12 = vpack.c.bf16 %v234_v9, %v233_v8  ;;  %v235_v14 = vld [vmem:[%s709_s5 + $0x40] sm:$0xff]  ;;  %v253_v16 = vld [vmem:[%s709_s5 + $0xd0] sm:$0xff] }
  0x13   :  { %403 = vmatprep.subr.bf16.mxu1 %v402_v29  ;;  %v434_v13 = vpack.c.bf16 %v252_v11, %v251_v10  ;;  %v236_v15 = vld [vmem:[%s709_s5 + $0x48] sm:$0xff]  ;;  %v254_v17 = vld [vmem:[%s709_s5 + $0xd8] sm:$0xff]  ;;  %v237_v20 = vld [vmem:[%s709_s5 + $0x50] sm:$0xff] }
  0x14   :  { %425 = vmatpush3.bf16.msra.mxu0 %v424_v0  ;;  %v436_v18 = vpack.c.bf16 %v236_v15, %v235_v14  ;;  %v438_v19 = vpack.c.bf16 %v254_v17, %v253_v16  ;;  %v238_v21 = vld [vmem:[%s709_s5 + $0x58] sm:$0xff]  ;;  %v255_v22 = vld [vmem:[%s709_s5 + $0xe0] sm:$0xff]  ;;  %v256_v23 = vld [vmem:[%s709_s5 + $0xe8] sm:$0xff] }
  0x15   :  { %427 = vmatprep.subr.bf16.mxu0 %v426_v1  ;;  %v440_v24 = vpack.c.bf16 %v238_v21, %v237_v20  ;;  %v442_v25 = vpack.c.bf16 %v256_v23, %v255_v22  ;;  %v341_v26 = vld [vmem:[%s710_s2] ss:$0 sm:$0xff]  ;;  %v240_v32 = vld [vmem:[%s709_s5 + $0x68] sm:$0xff]  ;;  %v241_v37 = vld [vmem:[%s709_s5 + $0x70] sm:$0xff] }
  0x16   :  { %405 = vmatpush1.bf16.msra.mxu1 %v404_v34  ;;  %v239_v31 = vld [vmem:[%s709_s5 + $0x60] sm:$0xff]  ;;  %v257_v34 = vld [vmem:[%s709_s5 + $0xf0] sm:$0xff]  ;;  %v242_v38 = vld [vmem:[%s709_s5 + $0x78] sm:$0xff] }
  0x17   :  { %407 = vmatprep.subr.bf16.mxu1 %v406_v35  ;;  %v444_v33 = vpack.c.bf16 %v240_v32, %v239_v31  ;;  %v258_v35 = vld [vmem:[%s709_s5 + $0xf8] sm:$0xff]  ;;  %v448_v39 = vpack.c.bf16 %v242_v38, %v241_v37  ;;  %v142_v43 = vld [vmem:[%s711_s4] sm:$0x3] }
  0x18   :  { %429 = vmatpush3.bf16.msra.mxu0 %v428_v6  ;;  %v446_v36 = vpack.c.bf16 %v258_v35, %v257_v34  ;;  %v343_v54 = vld [vmem:[%s712_s6] ss:$0 sm:$0xff] }
  0x19   :  { %431 = vmatprep.subr.bf16.mxu0 %v430_v7 }
  0x1a   :  { %409 = vmatpush1.bf16.msra.mxu1 %v408_v40  ;;  %v144_v40 = vlaneseq }
  0x1b   :  { %411 = vmatprep.subr.bf16.mxu1 %v410_v41 }
  0x1c   :  { %433 = vmatpush3.bf16.msra.mxu0 %v432_v12  ;;  %v145_v41 = vshrl.u32 %v144_v40, 7 }
  0x1d   :  { %435 = vmatprep.subr.bf16.mxu0 %v434_v13 }
  0x1e   :  { %413 = vmatpush1.bf16.msra.mxu1 %v412_v44  ;;  %v146_v42 = vsub.s32 0, %v145_v41  ;;  %v150_v44 = vsub.s32 1, %v145_v41 }
  0x1f   :  { %415 = vmatprep.subr.bf16.mxu1 %v414_v47 }
  0x20   :  { %437 = vmatpush3.bf16.msra.mxu0 %v436_v18  ;;  %v147_v45 = vrot.slane %v142_v43, %v146_v42  ;;  %v151_v46 = vrot.slane %v142_v43, %v150_v44 }
  0x21   :  { %439 = vmatprep.subr.bf16.mxu0 %v438_v19 }
  0x22   :  { %417 = vmatpush1.bf16.msra.mxu1 %v416_v50 }
  0x24   :  { %441 = vmatpush3.bf16.msra.mxu0 %v440_v24 }
  0x25   :  { %443 = vmatprep.subr.bf16.mxu0 %v442_v25 }
  0x28   :  { %445 = vmatpush3.bf16.msra.mxu0 %v444_v33 }
  0x29   :  { %447 = vmatprep.subr.bf16.mxu0 %v446_v36 }
  0x2c   :  { %449 = vmatpush3.bf16.msra.mxu0 %v448_v39 }
  0xd6   :  { %v105_v27 = vpop.f32.mrb[0].mxu0 }
  0xd7   :  { %v106_v28 = vadd.f32 %v341_v26, %v105_v27  ;;  %v385_v29 = vpop.f32.mrb[1].mxu0 }
  0xd9   :  { %v109_v30 = vmax.f32 %v106_v28, 0.0 }
  0xdb   :  { %219 = vmatmul.mubr.f32.vlgmr.msra.gmra.mrb[0].mxu1 %v109_v30 }
 0x1ae   :  { %v220_v47 = vpop.f32.mrb[0].mxu1 }
 0x1af   :  { %v221_v48 = vadd.f32 %v220_v47, %v147_v45  ;;  %v222_v49 = vpop.f32.mrb[1].mxu1 }
 0x1b0   :  { %v223_v50 = vadd.f32 %v222_v49, %v151_v46 }
 0x1b1   :  { %v225_v52 = vmax.f32 %v221_v48, 0.0 }
 0x1b2   :  { %v226_v51 = vmax.f32 %v223_v50, 0.0 }
 0x1b4   :  { %330 = vmatprep.mubr.f32.mxu0 %v226_v51 }
 0x1b5   :  { %331 = vmatmul.mubr.f32.vlgmr.msra.gmra.mrb[2].mxu0 %v225_v52 }
 0x288   :  { %v378_v53 = vpop.f32.mrb[2].mxu0 }
 0x289   :  { %v379_v55 = vpop.f32.mrb[3].mxu0 }
 0x28a   :  { %v380_v56 = vadd.f32 %v379_v55, %v378_v53 }
 0x28c   :  { %v333_v57 = vadd.f32 %v380_v56, %v343_v54 }
 0x28e   :  { %336 = vst.msk [vmem:[%s713_s7] sm:$0xff] %vm35_vm0, %v333_v57 }

</bundles_post_ra>
